<compile_context>
chip_gen: v5e
topology: v5e:2x2
jax: 0.10.0
libtpu: 0.0.40
codegen_flags: <defaults>
</compile_context>

<pallas_src>
import functools

import jax
import jax.numpy as jnp
from jax.experimental import pallas as pl
from jax.experimental.pallas import tpu as pltpu


def _round_up(a, b):
    return ((a + b - 1) // b) * b


def _cleanup_kv_kernel(x_ref, kt_ref, v_ref, o_ref):
    # x_ref: (tm, D)  kt_ref: (D, S)  v_ref: (S, D)  o_ref: (tm, D)
    x = x_ref[...].astype(jnp.float32)

    # L2-normalize along model dim in f32 (matches torch.linalg.norm + 1e-9).
    # One full-precision reciprocal per row, then a broadcast multiply.
    norm = jnp.sqrt(jnp.sum(x * x, axis=-1, keepdims=True))
    inv_norm = pl.reciprocal(norm + 1e-9, approx=False)
    xn = x * inv_norm

    # scores = xn @ keys^T; keys arrive pre-transposed as (D, S), so no
    # per-step transpose. Operands stay in the params' native dtype (bf16 on
    # v6e/v7x feeds the fast MXU path); accumulate in f32.
    scores = jnp.dot(
        xn.astype(kt_ref.dtype), kt_ref[...], preferred_element_type=jnp.float32
    )  # (tm, S), f32

    # Softmax with deferred normalization: compute un-normalized exp weights,
    # matmul with V, then scale the (tm, D) result by 1/row_sum (EUP approx).
    m = jnp.max(scores, axis=-1, keepdims=True)
    e = jnp.exp(scores - m)                                 # (tm, S)
    denom = jnp.sum(e, axis=-1, keepdims=True)              # (tm, 1)

    acc = jnp.dot(
        e.astype(v_ref.dtype), v_ref[...], preferred_element_type=jnp.float32
    )  # (tm, D)

    o_ref[...] = (acc * pl.reciprocal(denom, approx=True)).astype(o_ref.dtype)


@functools.partial(jax.jit, static_argnames=("block_m",))
def cleanup_kv(x, keys, values, *, block_m=4096):
    """x: (..., D); keys/values: (S, D). Returns same shape/dtype as x."""
    orig_shape = x.shape
    D = orig_shape[-1]
    S = keys.shape[0]

    x2 = x.reshape(-1, D)
    M = x2.shape[0]

    # Transpose keys once (tiny (S, D) array) so the resident kernel tile is
    # (D, S): lane-dense and no in-kernel transpose.
    keys_t = keys.T  # (D, S)

    # Row tile: as large as block_m allows (amortizes the ~0.35 us per-grid-step
    # overhead), always a multiple of 8 (sublane), and split into >=2 grid steps
    # when M allows so both v7x TensorCores get work.
    tm = _round_up(max(1, min(block_m, M)), 8)
    if M > 8 and pl.cdiv(M, tm) < 2:
        tm = _round_up(pl.cdiv(M, 2), 8)
    grid = (pl.cdiv(M, tm),)

    out = pl.pallas_call(
        _cleanup_kv_kernel,
        out_shape=jax.ShapeDtypeStruct((M, D), x.dtype),
        grid_spec=pltpu.PrefetchScalarGridSpec(
            num_scalar_prefetch=0,
            grid=grid,
            in_specs=[
                pl.BlockSpec((tm, D), lambda i: (i, 0)),   # x rows (tiled)
                pl.BlockSpec((D, S), lambda i: (0, 0)),    # keys^T (resident)
                pl.BlockSpec((S, D), lambda i: (0, 0)),    # values (resident)
            ],
            out_specs=pl.BlockSpec((tm, D), lambda i: (i, 0)),
        ),
        compiler_params=pltpu.CompilerParams(
            dimension_semantics=("parallel",),
        ),
    )(x2, keys_t, values)

    return out.reshape(orig_shape)


def _reference(x, keys, values):
    xf = x.astype(jnp.float32)
    xn = xf / (jnp.linalg.norm(xf, axis=-1, keepdims=True) + 1e-9)
    scores = xn @ keys.astype(jnp.float32).T
    w = jax.nn.softmax(scores, axis=-1)
    return (w @ values.astype(jnp.float32)).astype(x.dtype)


def _check(x, keys_p, values_p):
    out = jax.block_until_ready(cleanup_kv(x, keys_p, values_p))
    ref = _reference(x, keys_p, values_p)
    assert out.shape == x.shape
    # Tolerance accounts for the approximate EUP reciprocal on the softmax
    # denominator (error is purely relative to the output); all accumulation
    # and the L2 norm are exact f32.
    assert jnp.allclose(out, ref, atol=5e-3, rtol=5e-3), (
        f"max abs err {jnp.max(jnp.abs(out - ref))}"
    )


if __name__ == "__main__":
    # Shapes consistent with the module: model_dims=32, num_support=256,
    # x of shape (batch=2, seq=8, model_dims=32).
    model_dims = 32
    num_support = 256
    batch, seq = 2, 8

    key = jax.random.PRNGKey(0)
    kx, kk, kv, kx2 = jax.random.split(key, 4)

    x = jax.random.normal(kx, (batch, seq, model_dims), dtype=jnp.float32)
    keys_p = jax.random.normal(kk, (num_support, model_dims), dtype=jnp.float32)
    values_p = jax.random.normal(kv, (num_support, model_dims), dtype=jnp.float32)

    # Main check (even row count -> full blocks).
    _check(x, keys_p, values_p)

    # Ragged check: M = 3*5 = 15 rows exercises the bounded partial last block
    # (no wrapper-side padding / slicing).
    x_ragged = jax.random.normal(kx2, (3, 5, model_dims), dtype=jnp.float32)
    _check(x_ragged, keys_p, values_p)

    print("KERNEL_OK")
</pallas_src>

<mosaic_0001>
module attributes {stable_mosaic.version = 11 : i64} {
  func.func @_cleanup_kv_kernel(%arg0: i32, %arg1: memref<8x32xf32, #tpu.memory_space<vmem>>, %arg2: memref<32x256xf32, #tpu.memory_space<vmem>>, %arg3: memref<256x32xf32, #tpu.memory_space<vmem>>, %arg4: memref<8x32xf32, #tpu.memory_space<vmem>>) attributes {dimension_semantics = [#tpu.dimension_semantics<parallel>], iteration_bounds = array<i64: 2>, scalar_prefetch = 0 : i64, scratch_operands = 0 : i64, tpu.core_type = #tpu.core_type<tc>, window_params = [{transform_indices = @transform_0, window_bounds = array<i64: 8, 32>}, {pipeline_mode = #tpu.pipeline_mode<synchronous>, transform_indices = @transform_1, window_bounds = array<i64: 32, 256>}, {pipeline_mode = #tpu.pipeline_mode<synchronous>, transform_indices = @transform_2, window_bounds = array<i64: 256, 32>}, {transform_indices = @transform_3, window_bounds = array<i64: 8, 32>}]} {
    %c0 = arith.constant 0 : index
    %c0_0 = arith.constant 0 : index
    %0 = vector.load %arg1[%c0, %c0_0] : memref<8x32xf32, #tpu.memory_space<vmem>>, vector<8x32xf32>
    %1 = arith.mulf %0, %0 : vector<8x32xf32>
    %cst = arith.constant dense<0.000000e+00> : vector<8xf32>
    %2 = vector.multi_reduction <add>, %1, %cst [1] : vector<8x32xf32> to vector<8xf32>
    %3 = vector.shape_cast %2 : vector<8xf32> to vector<8x1xf32>
    %4 = math.sqrt %3 : vector<8x1xf32>
    %cst_1 = arith.constant 9.99999971E-10 : f32
    %5 = vector.broadcast %cst_1 : f32 to vector<8x1xf32>
    %6 = arith.addf %4, %5 : vector<8x1xf32>
    %7 = tpu.reciprocal %6 : vector<8x1xf32> -> vector<8x1xf32>
    %8 = vector.broadcast %7 : vector<8x1xf32> to vector<8x32xf32>
    %9 = arith.mulf %0, %8 : vector<8x32xf32>
    %c0_2 = arith.constant 0 : index
    %c0_3 = arith.constant 0 : index
    %10 = vector.load %arg2[%c0_2, %c0_3] : memref<32x256xf32, #tpu.memory_space<vmem>>, vector<32x256xf32>
    %cst_4 = arith.constant dense<0.000000e+00> : vector<8x256xf32>
    %11 = tpu.matmul %9, %10, %cst_4 {dimension_numbers = #tpu.dot_dimension_numbers<[1], [0], [0], [1], [0, 0, 1, 1], [], []>} : vector<8x32xf32>, vector<32x256xf32>, vector<8x256xf32> -> vector<8x256xf32>
    %cst_5 = arith.constant dense<0xFF800000> : vector<8xf32>
    %12 = vector.multi_reduction <maximumf>, %11, %cst_5 [1] : vector<8x256xf32> to vector<8xf32>
    %13 = vector.shape_cast %12 : vector<8xf32> to vector<8x1xf32>
    %14 = vector.broadcast %13 : vector<8x1xf32> to vector<8x256xf32>
    %15 = arith.subf %11, %14 : vector<8x256xf32>
    %16 = math.exp %15 : vector<8x256xf32>
    %cst_6 = arith.constant dense<0.000000e+00> : vector<8xf32>
    %17 = vector.multi_reduction <add>, %16, %cst_6 [1] : vector<8x256xf32> to vector<8xf32>
    %18 = vector.shape_cast %17 : vector<8xf32> to vector<8x1xf32>
    %c0_7 = arith.constant 0 : index
    %c0_8 = arith.constant 0 : index
    %19 = vector.load %arg3[%c0_7, %c0_8] : memref<256x32xf32, #tpu.memory_space<vmem>>, vector<256x32xf32>
    %cst_9 = arith.constant dense<0.000000e+00> : vector<8x32xf32>
    %20 = tpu.matmul %16, %19, %cst_9 {dimension_numbers = #tpu.dot_dimension_numbers<[1], [0], [0], [1], [0, 0, 1, 1], [], []>} : vector<8x256xf32>, vector<256x32xf32>, vector<8x32xf32> -> vector<8x32xf32>
    %21 = tpu.reciprocal %18 {approx = true} : vector<8x1xf32> -> vector<8x1xf32>
    %22 = vector.broadcast %21 : vector<8x1xf32> to vector<8x32xf32>
    %23 = arith.mulf %20, %22 : vector<8x32xf32>
    %c0_10 = arith.constant 0 : index
    %c0_11 = arith.constant 0 : index
    %24 = vector.load %arg4[%c0_10, %c0_11] : memref<8x32xf32, #tpu.memory_space<vmem>>, vector<8x32xf32>
    tpu.vector_store %arg4[%c0_10, %c0_11], %23 {strides = array<i32>} : memref<8x32xf32, #tpu.memory_space<vmem>>, vector<8x32xf32>,
    return
  }
  func.func @transform_0(%arg0: i32) -> (i32, i32) {
    %c0_i32 = arith.constant 0 : i32
    %c0_i32_0 = arith.constant 0 : i32
    return %arg0, %c0_i32 : i32, i32
  }
  func.func @transform_1(%arg0: i32) -> (i32, i32) {
    %c0_i32 = arith.constant 0 : i32
    %c0_i32_0 = arith.constant 0 : i32
    %c0_i32_1 = arith.constant 0 : i32
    return %c0_i32, %c0_i32_0 : i32, i32
  }
  func.func @transform_2(%arg0: i32) -> (i32, i32) {
    %c0_i32 = arith.constant 0 : i32
    %c0_i32_0 = arith.constant 0 : i32
    %c0_i32_1 = arith.constant 0 : i32
    return %c0_i32, %c0_i32_0 : i32, i32
  }
  func.func @transform_3(%arg0: i32) -> (i32, i32) {
    %c0_i32 = arith.constant 0 : i32
    %c0_i32_0 = arith.constant 0 : i32
    return %arg0, %c0_i32 : i32, i32
  }
}

</mosaic_0001>

<bundles_post_ra>
// kernel: cleanup_kv.1
= control target key start
LH: loop header
LB: loop body
LE: loop exit
PB: predicated region body
PF: predicated region fallthrough
CT: control target
= control target key end

     0   :  { %8 = vsyncpa [#allocation3], 0  ;;  %s767_s0 = inlined_call_operand.vmem [shape: f32[16,32], index: 0, kind: input, shape index: {}]   ;;  %s768_s1 = inlined_call_operand.vmem [shape: f32[32,256], index: 1, kind: input, shape index: {}]   ;;  %s769_s2 = inlined_call_operand.vmem [shape: f32[256,32], index: 2, kind: input, shape index: {}]   ;;  %s770_s3 = inlined_call_operand.hbm [shape: f32[16,32], index: 3, kind: output, shape index: {}]  }
   0x1   :  { %10 = vsyncpa [#allocation3 + $0x1], 0  ;;  %s558_s12 = smov 0   ;;  %s560_s13 = smov 0  }
   0x2   :  { %s562_s14 = smov 0   ;;  %s564_s15 = smov 0  }
   0x3 LB: > { %s579_s16 = sadd.s32 4294967295, %s536_s15   ;;  %s413_s17 = sadd.s32 4294967294, %s536_s15   ;;  %s536_s15 = sphi %s564_s15, %s776_s15   ;;  %s532_s14 = sphi %s562_s14, %s775_s14   ;;  %s528_s13 = sphi %s560_s13, %s774_s13   ;;  %s524_s12 = sphi %s558_s12, %s773_s12  }
   0x4   : > { %s583_s18 = sadd.s32 1, %s536_s15   ;;  %s91_s19 = sadd.s32 1, %s532_s14 }
   0x5   : > { %s88_s20 = ssub.s32 %s536_s15, %s583_s18  ;;  %p101_p0 = scmp.ne.s32.totalorder %s532_s14, %s528_s13 }
   0x6   : > { %p89_p1 = scmp.eq.s32.totalorder %s88_s20, 0  ;;  %p102_p2 = scmp.eq.s32.totalorder %s579_s16, 1 }
   0x7   : > { %p107_p3 = scmp.ne.s32.totalorder %s528_s13, %s524_s12  ;;  %p108_p4 = scmp.eq.s32.totalorder %s413_s17, 1 }
   0x8   : > { %s594_s21 = scalar_select %p89_p1, %s532_s14, %s91_s19  }
   0x9   : > { %p596_p5 = por %p102_p2, %p101_p0  ;;  %p600_p6 = por %p108_p4, %p107_p3 }
   0xa   : > { %p416_p7 = scmp.ge.s32.totalorder %s536_s15, 1  ;;  %p139_p8 = scmp.lt.s32.totalorder %s536_s15, 3 }
   0xc   : > { %p140_p9 = pnand %p416_p7, %p139_p8 }
   0xd   : > { %p162_p10 = scmp.lt.s32.totalorder (!%p140_p9), %s579_s16, 1  ;;  %s159_s10 = sand.u32 (!%p140_p9), 1, %s528_s13  }
   0xe   : > { %143 = sbr.rel (%p140_p9) target bundleno = 580 (0x244), region = 32  ;;  %s417_s11 = sshll.u32 (!%p140_p9), %s159_s10, 3 }
   0xf   : > { %s422_s17 = sshll.u32 (!%p140_p9), %s579_s16, 3  ;;  %s494_s5 = scalar_lea.hbm (!%p140_p9), %s770_s3, 16 }
  0x13   : > { %s163_s24 = scalar_select %p162_p10, %s579_s16, 1  ;;  %vm168_vm0 = vcmask 261120   ;;  %v206_v3 = vld [vmem:[%s768_s1 + $0x30] sm:$0xff]  ;;  %v207_v4 = vld [vmem:[%s768_s1 + $0x38] sm:$0xff]  ;;  %v204_v5 = vld [vmem:[%s768_s1 + $0x20] sm:$0xff] }
  0x14   : > { %223 = vmatpush.msra.mxu0 %v206_v3  ;;  %243 = vmatpush.msra.mxu1 %v207_v4  ;;  %v205_v6 = vld [vmem:[%s768_s1 + $0x28] sm:$0xff]  ;;  %v202_v7 = vld [vmem:[%s768_s1 + $0x10] sm:$0xff]  ;;  %v203_v8 = vld [vmem:[%s768_s1 + $0x18] sm:$0xff] }
  0x15   : > { %s418_s25 = sshll.u32 %s163_s24, 3  ;;  %v200_v9 = vld [vmem:[%s768_s1] sm:$0xff]  ;;  %v201_v10 = vld [vmem:[%s768_s1 + $0x8] sm:$0xff]  ;;  %v278_v34 = vld [vmem:[%s769_s2 + $0x78] sm:$0xff]  ;;  %s349_s24 = scalar_lea.hbm %s770_s3, %s422_s17 }
  0x16   : > { %s165_s28 = scalar_lea.vmem %s767_s0, %s418_s25  ;;  %224 = vmatpush.msra.mxu0 %v204_v5  ;;  %244 = vmatpush.msra.mxu1 %v205_v6  ;;  %v294_v35 = vld [vmem:[%s769_s2 + $0xf8] sm:$0xff]  ;;  %v277_v36 = vld [vmem:[%s769_s2 + $0x70] sm:$0xff]  ;;  %v276_v38 = vld [vmem:[%s769_s2 + $0x68] sm:$0xff]  ;;  %s161_s25 = scalar_lea.vmem [#allocation2], %s417_s11 }
  0x17   : > { %v166_v0 = vld [vmem:[%s165_s28] sm:$0xff]  ;;  %295 = vmatpush.msra.mxu2 %v278_v34  ;;  %315 = vmatpush.msra.mxu3 %v294_v35  ;;  %v293_v37 = vld [vmem:[%s769_s2 + $0xf0] sm:$0xff]  ;;  %v292_v39 = vld [vmem:[%s769_s2 + $0xe8] sm:$0xff]  ;;  %s351_s26 = sshll.u32 %s161_s25, 4  ;;  %s353_s27 = sshll.u32 %s349_s24, 4  ;;  %s352_s26 = int_to_ptr.vmem [resolvable:$true] %s351_s26  ;;  %s354_s27 = int_to_ptr.hbm [resolvable:$true] %s353_s27 }
  0x18   : > { %v167_v1 = vmul.f32 %v166_v0, %v166_v0  ;;  %225 = vmatpush.msra.mxu0 %v202_v7  ;;  %245 = vmatpush.msra.mxu1 %v203_v8  ;;  %v275_v40 = vld [vmem:[%s769_s2 + $0x60] sm:$0xff]  ;;  %v274_v42 = vld [vmem:[%s769_s2 + $0x58] sm:$0xff]  ;;  %v273_v44 = vld [vmem:[%s769_s2 + $0x50] sm:$0xff]  ;;  %s339_s28 = scalar_lea.sflag [#allocation3], %s159_s10  ;;  %s488_s16 = sshra.s32 %s354_s27, 4  ;;  %s489_s16 = int_to_ptr.hbm [resolvable:$true] %s488_s16 }
  0x19   : > { %296 = vmatpush.msra.mxu2 %v277_v36  ;;  %316 = vmatpush.msra.mxu3 %v293_v37  ;;  %v291_v41 = vld [vmem:[%s769_s2 + $0xe0] sm:$0xff]  ;;  %v290_v43 = vld [vmem:[%s769_s2 + $0xd8] sm:$0xff]  ;;  %v289_v45 = vld [vmem:[%s769_s2 + $0xd0] sm:$0xff]  ;;  %s490_s29 = scalar_lea.hbm %s489_s16, 8  ;;  %p495_p0 = scmp.lt.s32.totalorder %s489_s16, %s770_s3 }
  0x1a   : > { %v169_v2 = vsel %vm168_vm0, %v167_v1, 0.0  ;;  %226 = vmatpush.msra.mxu0 %v200_v9  ;;  %246 = vmatpush.msra.mxu1 %v201_v10  ;;  %v272_v46 = vld [vmem:[%s769_s2 + $0x48] sm:$0xff]  ;;  %v271_v48 = vld [vmem:[%s769_s2 + $0x40] sm:$0xff]  ;;  %v270_v50 = vld [vmem:[%s769_s2 + $0x38] sm:$0xff]  ;;  %p491_p11 = scmp.ne.s32.totalorder %s489_s16, %s490_s29  ;;  %p496_p1 = scmp.lt.s32.totalorder %s494_s5, %s490_s29 }
  0x1b   : > { %170 = vadd.xlane.f32.xlu0 %v169_v2  ;;  %297 = vmatpush.msra.mxu2 %v276_v38  ;;  %v288_v47 = vld [vmem:[%s769_s2 + $0xc8] sm:$0xff]  ;;  %v287_v49 = vld [vmem:[%s769_s2 + $0xc0] sm:$0xff]  ;;  %v286_v51 = vld [vmem:[%s769_s2 + $0xb8] sm:$0xff] }
  0x1c   : > { %317 = vmatpush.msra.mxu3 %v292_v39  ;;  %v269_v52 = vld [vmem:[%s769_s2 + $0x30] sm:$0xff]  ;;  %v268_v57 = vld [vmem:[%s769_s2 + $0x28] sm:$0xff]  ;;  %v267_v59 = vld [vmem:[%s769_s2 + $0x20] sm:$0xff]  ;;  %p492_p12 = pnand %p491_p11, %p596_p5  ;;  %p497_p2 = por %p496_p1, %p495_p0 }
  0x1d   : > { %298 = vmatpush.msra.mxu2 %v275_v40  ;;  %v285_v53 = vld [vmem:[%s769_s2 + $0xb0] sm:$0xff]  ;;  %v284_v58 = vld [vmem:[%s769_s2 + $0xa8] sm:$0xff]  ;;  %v283_v60 = vld [vmem:[%s769_s2 + $0xa0] sm:$0xff] }
  0x1e   : > { %318 = vmatpush.msra.mxu3 %v291_v41  ;;  %v266_v61 = vld [vmem:[%s769_s2 + $0x18] sm:$0xff]  ;;  %v265_v63 = vld [vmem:[%s769_s2 + $0x10] sm:$0xff]  ;;  %v264_v1 = vld [vmem:[%s769_s2 + $0x8] sm:$0xff]  ;;  %p493_p13 = pneg %p492_p12 }
  0x1f   : > { %299 = vmatpush.msra.mxu2 %v274_v42  ;;  %v282_v62 = vld [vmem:[%s769_s2 + $0x98] sm:$0xff]  ;;  %v280_v2 = vld [vmem:[%s769_s2 + $0x88] sm:$0xff]  ;;  %v263_v3 = vld [vmem:[%s769_s2] sm:$0xff] }
  0x20   : > { %319 = vmatpush.msra.mxu3 %v290_v43  ;;  %v279_v4 = vld [vmem:[%s769_s2 + $0x80] sm:$0xff]  ;;  %p498_p3 = pnand %p497_p2, %p493_p13 }
  0x21   : > { %300 = vmatpush.msra.mxu2 %v273_v44 }
  0x22   : > { %320 = vmatpush.msra.mxu3 %v289_v45 }
  0x23   : > { %301 = vmatpush.msra.mxu2 %v272_v46 }
  0x24   : > { %321 = vmatpush.msra.mxu3 %v288_v47 }
  0x25   : > { %302 = vmatpush.msra.mxu2 %v271_v48 }
  0x26   : > { %322 = vmatpush.msra.mxu3 %v287_v49 }
  0x27   : > { %303 = vmatpush.msra.mxu2 %v270_v50 }
  0x28   : > { %323 = vmatpush.msra.mxu3 %v286_v51 }
  0x29   : > { %304 = vmatpush.msra.mxu2 %v269_v52 }
  0x2a   : > { %324 = vmatpush.msra.mxu3 %v285_v53 }
  0x2b   : > { %305 = vmatpush.msra.mxu2 %v268_v57 }
  0x2c   : > { %325 = vmatpush.msra.mxu3 %v284_v58 }
  0x2d   : > { %306 = vmatpush.msra.mxu2 %v267_v59 }
  0x2e   : > { %326 = vmatpush.msra.mxu3 %v283_v60 }
  0x2f   : > { %307 = vmatpush.msra.mxu2 %v266_v61 }
  0x30   : > { %327 = vmatpush.msra.mxu3 %v282_v62 }
  0x31   : > { %308 = vmatpush.msra.mxu2 %v265_v63 }
  0x33   : > { %309 = vmatpush.msra.mxu2 %v264_v1 }
  0x35   : > { %310 = vmatpush.msra.mxu2 %v263_v3 }
  0x8e   : > { %v171_v11 = vpop.xlane.xlu0 %170 }
  0x8f   : > { %464 = vrsqrt.f32 %v171_v11  ;;  %vm179_vm1 = vcmp.eq.f32.partialorder %v171_v11, inf  ;;  %v182_v19 = vand.u32 2147483648, %v171_v11  ;;  %vm181_vm2 = vcmp.eq.f32.partialorder %v171_v11, 0.0 }
  0x95   : > { %v465_v12 = vpop.eup %464 }
  0x96   : > { %v173_v13 = vmul.f32 %v465_v12, %v171_v11 }
  0x98   : > { %v174_v14 = vmul.f32 %v465_v12, %v173_v13 }
  0x9a   : > { %v175_v15 = vmul.f32 0.5, %v174_v14 }
  0x9c   : > { %v176_v16 = vsub.f32 1.5, %v175_v15 }
  0x9e   : > { %v177_v17 = vmul.f32 %v465_v12, %v176_v16 }
  0xa0   : > { %v178_v18 = vmul.f32 %v177_v17, %v171_v11 }
  0xa2   : > { %v180_v20 = vsel %vm179_vm1, %v171_v11, %v178_v18 }
  0xa3   : > { %v183_v21 = vsel %vm181_vm2, %v182_v19, %v180_v20 }
  0xa4   : > { %v184_v22 = vadd.f32 1e-09, %v183_v21 }
  0xa6   : > { %466 = vrcp.f32 %v184_v22  ;;  %v196_v26 = vand.u32 2147483648, %v184_v22  ;;  %v194_v28 = vand.u32 2147483647, %v184_v22  ;;  %vm190_vm4 = vweird.f32 %v184_v22 }
  0xa8   : > { %v197_v30 = vor.u32 1.1754944e-38, %v196_v26  ;;  %vm195_vm6 = vcmp.eq.f32.partialorder %v194_v28, 8.507059e+37 }
  0xac   : > { %v467_v23 = vpop.eup %466 }
  0xad   : > { %v186_v24 = vmul.f32 %v467_v23, %v184_v22  ;;  %vm191_vm3 = vweird.f32 %v467_v23 }
  0xae   : > { %vm192_vm5 = vmor %vm190_vm4, %vm191_vm3 }
  0xaf   : > { %v187_v25 = vsub.f32 1.0, %v186_v24 }
  0xb1   : > { %v188_v27 = vmul.f32 %v467_v23, %v187_v25 }
  0xb3   : > { %v189_v29 = vadd.f32 %v467_v23, %v188_v27 }
  0xb5   : > { %v193_v31 = vsel %vm192_vm5, %v467_v23, %v189_v29 }
  0xb6   : > { %v198_v32 = vsel %vm195_vm6, %v197_v30, %v193_v31 }
  0xb7   : > { %v199_v33 = vmul.f32 %v198_v32, %v166_v0  ;;  %v281_v0 = vld [vmem:[%s769_s2 + $0x90] sm:$0xff] }
  0xb8   : > { %328 = vmatpush.msra.mxu3 %v281_v0 }
  0xb9   : > { %419 = vmatmul.msk.f32.vlgmr.msra.gmra.mxu0 %vm168_vm0, %v199_v33  ;;  %420 = vmatmul.msk.f32.vlgmr.msra.gmra.mxu1 %vm168_vm0, %v199_v33 }
  0xba   : > { %329 = vmatpush.msra.mxu3 %v280_v2 }
  0xbc   : > { %330 = vmatpush.msra.mxu3 %v279_v4 }
 0x136   : > { %v228_v54 = vpop.f32.mrf.mxu0  ;;  %v248_v55 = vpop.f32.mrf.mxu1 }
 0x137   : > { %v251_v56 = vmax.f32 %v228_v54, %v248_v55 }
 0x139   : > { %252 = vmax.xlane.f32.xlu0 %v251_v56 }
 0x1ac   : > { %v253_v5 = vpop.xlane.xlu0 %252 }
 0x1ad   : > { %v254_v6 = vsub.f32 %v228_v54, %v253_v5  ;;  %v255_v7 = vsub.f32 %v248_v55, %v253_v5 }
 0x1af   : > { %v256_v8 = vmul.f32 1.442695, %v254_v6  ;;  %v258_v9 = vmul.f32 1.442695, %v255_v7 }
 0x1b1   : > { %468 = vpow2.f32 %v256_v8 }
 0x1b2   : > { %470 = vpow2.f32 %v258_v9 }
 0x1b7   : > { %v469_v10 = vpop.eup %468 }
 0x1b8   : > { %v471_v11 = vpop.eup %470  ;;  %311 = vmatmul.f32.vlgmr.msra.gmra.mxu2 %v469_v10 }
 0x1b9   : > { %331 = vmatmul.f32.vlgmr.msra.gmra.mxu3 %v471_v11  ;;  %v260_v12 = vadd.f32 %v471_v11, %v469_v10 }
 0x1bb   : > { %261 = vadd.xlane.f32.xlu1 %v260_v12 }
 0x22e   : > { %v262_v13 = vpop.xlane.xlu1 %261 }
 0x22f   : > { %472 = vrcp.f32 %v262_v13 }
 0x235   : > { %v473_v17 = vpop.eup %472 }
 0x23b   : > { %v312_v14 = vpop.f32.mrf.mxu2 }
 0x23c   : > { %v332_v15 = vpop.f32.mrf.mxu3 }
 0x23d   : > { %v333_v16 = vadd.f32 %v332_v15, %v312_v14 }
 0x23f   : > { %v336_v18 = vmul.f32 %v473_v17, %v333_v16 }
 0x241   : > { %337 = vst.msk [vmem:[%s161_s25] sm:$0xff] %vm168_vm0, %v336_v18 }
 0x242   : > { %501 = shalt.err (!%p498_p3)
}
 0x243   : > { %425 = dma.vmem_to_hbm [thread:$0]  (%p596_p5), %s352_s26, 128, %s354_s27, %s339_s28  }
 0x244 PF: > { %p431_p4 = scmp.ge.s32.totalorder %s536_s15, 2  ;;  %s365_s8 = sand.u32 1, %s524_s12  }
 0x245   : > { %s366_s9 = scalar_lea.sflag [#allocation3], %s365_s8 }
 0x246   : > { %p428_p7 = pnand %p431_p4, %p600_p6 }
 0x248   : > { %p429_p8 = pneg %p428_p7 }
 0x24a   : > { %519 = dma.done.wait (%p429_p8), %s366_s9, 128  }
 0x24b   : > { %521 = vsyncadd (%p429_p8), %s366_s9, 4294967168  ;;  %p13_p9 = scmp.ge.s32.totalorder %s583_s18, 4   ;;  %s773_s12 = smov %s528_s13 }
 0x24c   : > { %s774_s13 = smov %s532_s14  ;;  %s775_s14 = smov %s594_s21 }
 0x24d   : > { %s776_s15 = smov %s583_s18  ;;  %15 = sbr.rel (!%p13_p9) target bundleno = 3 (0x3), region = 67 }
 0x252   :  { %372 = vsyncpa [#allocation3], 1 }
 0x253   :  { %374 = vsyncpa [#allocation3 + $0x1], 1 }

</bundles_post_ra>
